<compile_context>
chip_gen: v7x
topology: tpu7x:2x2x1
jax: 0.10.0
libtpu: 0.0.40
codegen_flags: <defaults>
</compile_context>

<pallas_src>
import functools

import numpy as np
import jax
import jax.numpy as jnp
from jax import lax
from jax.experimental import pallas as pl
from jax.experimental.pallas import tpu as pltpu

_LANES = 128
_TARGET_BLOCKS = 8                     # aim for >= ~8 balanced blocks (megacore + overlap)
_ELEM_BLOCK_BYTES = 4 * 1024 * 1024    # relu/silu: ~4 MiB per block
_POLY_BLOCK_BYTES = 2 * 1024 * 1024    # poly: smaller (several f32 temps per block)
_VMEM_LIMIT_BYTES = 48 * 1024 * 1024   # < v7x's 64 MiB physical VMEM


# ----------------------------- chip / dtype helpers -------------------------

@functools.lru_cache(maxsize=None)
def _pre_v6_chip():
    """True for chips without bf16 VPU/EUP (v5e and earlier)."""
    try:
        kind = jax.devices()[0].device_kind.lower()
    except Exception:
        return True
    return any(tag in kind for tag in ("v2", "v3", "v4", "v5"))


def _math_dtype(slab_dtype):
    """Elementwise math dtype: bf16 on v6e/v7x for bf16 slabs, else f32."""
    if jnp.dtype(slab_dtype) == jnp.dtype(jnp.bfloat16) and not _pre_v6_chip():
        return jnp.bfloat16
    return jnp.float32


# ----------------------------- Pallas kernels ------------------------------

def _relu_kernel(x_ref, y_ref):
    x = x_ref[...]
    y_ref[...] = jnp.maximum(x, 0.0).astype(y_ref.dtype)


def _silu_kernel(x_ref, y_ref, *, math_dtype):
    x = x_ref[...].astype(math_dtype)          # bf16 math on v6e/v7x, f32 on v5e
    y_ref[...] = (x * jax.nn.sigmoid(x)).astype(y_ref.dtype)


def _poly_kernel(x_ref, y_ref, bl_ref, *, coeffs, penalty_b, b_type,
                 ragged, valid_rows_last):
    """Horner polynomial + per-block boundary-loss partial.

    x_ref/y_ref: (tile_rows, 128) blocks of the flattened activation.
    bl_ref:      (1, 128) row; every lane holds this block's partial reduction
                 (sum for 'exp'/'l2', max for 'maxnorm').
    """
    x = x_ref[...].astype(jnp.float32)

    # Horner's rule, coefficients in descending-exponent order (np.polyfit).
    # TODO(synk): bf16 Horner on v6e/v7x would halve VALU pressure but changes
    # the fitted-polynomial accuracy; kept in f32.
    acc = jnp.full(x.shape, coeffs[0], dtype=jnp.float32)
    for c in coeffs[1:]:
        acc = acc * x + c
    y_ref[...] = acc.astype(y_ref.dtype)

    # Boundary-loss per-element term (f32).  Interior blocks need no masking:
    # only the Pallas-padded garbage rows of a ragged final block are excluded
    # (row-index compare against a compile-time constant).  The <=127 wrapper
    # zeros are corrected analytically in the wrapper.
    ax = jnp.abs(x)
    if b_type == "exp":
        excess = jnp.maximum(ax - penalty_b, 0.0)
        term = jnp.exp(excess) - 1.0
        reduce_fn = jnp.sum
    elif b_type == "l2":
        excess = jnp.maximum(ax - penalty_b, 0.0)
        term = excess * excess
        reduce_fn = jnp.sum
    else:  # maxnorm: |x| >= 0, so masking with 0 never changes the max
        term = ax
        reduce_fn = jnp.max

    if not ragged:
        bl_ref[...] = jnp.full(bl_ref.shape, reduce_fn(term), dtype=jnp.float32)
    else:
        is_last = pl.program_id(0) == pl.num_programs(0) - 1

        @pl.when(jnp.logical_not(is_last))
        def _():
            bl_ref[...] = jnp.full(bl_ref.shape, reduce_fn(term), dtype=jnp.float32)

        @pl.when(is_last)
        def _():
            rows = lax.broadcasted_iota(jnp.int32, term.shape, 0)
            masked = jnp.where(rows < valid_rows_last, term, 0.0)
            bl_ref[...] = jnp.full(bl_ref.shape, reduce_fn(masked), dtype=jnp.float32)


# ------------------------------ glue / wrappers -----------------------------

def _slab_dtype(dtype):
    if dtype in (jnp.dtype(jnp.float32), jnp.dtype(jnp.bfloat16)):
        return dtype
    return jnp.dtype(jnp.float32)


def _to_slab(x):
    """Flatten any-shape array to a lane-dense (rows, 128) slab."""
    flat = jnp.ravel(x).astype(_slab_dtype(x.dtype))
    n = flat.shape[0]
    rows = -(-n // _LANES)
    pad = rows * _LANES - n
    if pad:
        # TODO(synk): this pad (and the [:n] slice in _from_slab) each cost one
        # extra HBM copy when numel % 128 != 0; a 1-D blocked layout could avoid
        # it but risks 1-D iota/layout lowering issues in Mosaic.
        flat = jnp.pad(flat, (0, pad))
    return flat.reshape(rows, _LANES), n


def _from_slab(slab, n, shape):
    flat = slab.reshape(-1)
    if flat.shape[0] != n:
        flat = flat[:n]
    return flat.reshape(shape)


def _row_tiling(rows, itemsize, block_bytes):
    """Dtype-scaled row tile: matches block BYTES across dtypes, rounds to a
    sublane-pack multiple, and keeps >= ~_TARGET_BLOCKS balanced blocks when the
    row count permits (so both v7x TensorCores get work and DMA overlaps)."""
    align = max(8, 32 // itemsize)                   # 8 for f32, 16 for bf16
    max_rows = max(align, (block_bytes // (_LANES * itemsize)) // align * align)
    want = -(-rows // _TARGET_BLOCKS)
    tile_rows = min(max_rows, max(want, align))
    tile_rows = -(-tile_rows // align) * align
    num_blocks = -(-rows // tile_rows)
    return tile_rows, num_blocks


def _elementwise_forward(x, *, make_kernel, flops_per_elem, transc_per_elem):
    slab, n = _to_slab(x)
    rows = slab.shape[0]
    tile_rows, num_blocks = _row_tiling(rows, slab.dtype.itemsize, _ELEM_BLOCK_BYTES)
    slab_bytes = slab.size * slab.dtype.itemsize
    kernel = make_kernel(slab.dtype)

    out = pl.pallas_call(
        kernel,
        out_shape=jax.ShapeDtypeStruct(slab.shape, slab.dtype),
        grid=(num_blocks,),
        in_specs=[pl.BlockSpec((tile_rows, _LANES), lambda i: (i, 0))],
        out_specs=pl.BlockSpec((tile_rows, _LANES), lambda i: (i, 0)),
        compiler_params=pltpu.CompilerParams(
            dimension_semantics=("parallel",),
            vmem_limit_bytes=_VMEM_LIMIT_BYTES),
        cost_estimate=pl.CostEstimate(
            flops=flops_per_elem * slab.size,
            transcendentals=transc_per_elem * slab.size,
            bytes_accessed=2 * slab_bytes),
    )(slab)
    return _from_slab(out, n, x.shape)


def _poly_forward(x, *, coeffs, penalty_b, b_type):
    slab, n = _to_slab(x)
    rows = slab.shape[0]
    pad = slab.size - n
    tile_rows, num_blocks = _row_tiling(rows, slab.dtype.itemsize, _POLY_BLOCK_BYTES)
    ragged = num_blocks * tile_rows > rows            # Pallas garbage rows exist
    valid_rows_last = rows - (num_blocks - 1) * tile_rows
    slab_bytes = slab.size * slab.dtype.itemsize
    deg = len(coeffs) - 1

    kernel = functools.partial(
        _poly_kernel, coeffs=coeffs, penalty_b=penalty_b, b_type=b_type,
        ragged=ragged, valid_rows_last=valid_rows_last)

    out, partials = pl.pallas_call(
        kernel,
        out_shape=(
            jax.ShapeDtypeStruct(slab.shape, slab.dtype),
            jax.ShapeDtypeStruct((1, num_blocks * _LANES), jnp.float32),
        ),
        grid=(num_blocks,),
        in_specs=[pl.BlockSpec((tile_rows, _LANES), lambda i: (i, 0))],
        out_specs=(
            pl.BlockSpec((tile_rows, _LANES), lambda i: (i, 0)),
            pl.BlockSpec((1, _LANES), lambda i: (0, i)),
        ),
        compiler_params=pltpu.CompilerParams(
            dimension_semantics=("parallel",),
            vmem_limit_bytes=_VMEM_LIMIT_BYTES),
        cost_estimate=pl.CostEstimate(
            flops=(2 * deg + 6) * slab.size,
            transcendentals=(slab.size if b_type == "exp" else 0),
            bytes_accessed=2 * slab_bytes + num_blocks * _LANES * 4),
    )(slab)

    per_block = partials.reshape(num_blocks, _LANES)[:, 0]
    if b_type == "maxnorm":
        boundary_loss = jnp.max(per_block)
    else:
        total = jnp.sum(per_block)
        # Each wrapper-appended zero contributes a known constant (nonzero only
        # if penalty_B < 0); correct analytically instead of masking in-kernel.
        zero_excess = max(-penalty_b, 0.0)
        zero_term = (float(np.expm1(zero_excess)) if b_type == "exp"
                     else zero_excess * zero_excess)
        if pad and zero_term:
            total = total - pad * zero_term
        boundary_loss = total / n
    return _from_slab(out, n, x.shape), boundary_loss


class PolyFitPallas:
    """JAX/Pallas equivalent of PolyFit (least_square initialization)."""

    def __init__(self, activation, B, samp_size, pol_degree, learnable_coeff,
                 initialization, boundary_loss_params):
        self.b_type = boundary_loss_params["type"]
        if self.b_type in ("exp", "l2"):
            self.penalty_B = float(boundary_loss_params["penalty_B"])
        elif self.b_type == "maxnorm":
            self.penalty_B = 0.0
        else:
            raise Exception("Unknow boundary loss type " + self.b_type)

        if initialization == "least_square":
            coefs = self._least_square_fit(activation, B, samp_size, pol_degree)
        else:
            # TODO(synk): 'remez' initialization relies on an undefined `linalg`
            # in the reference; only least_square is reproduced here.
            raise ValueError(f"Unsupported initialization: {initialization}")

        self.coefficients = np.asarray(coefs, dtype=np.float32)  # descending exps
        self.current_boundary_loss = 0.0
        # TODO(synk): coefficients are baked as compile-time constants (forward
        # only); learnable coefficients would need a runtime SMEM operand.
        self._fn = jax.jit(functools.partial(
            _poly_forward,
            coeffs=tuple(float(c) for c in self.coefficients),
            penalty_b=self.penalty_B,
            b_type=self.b_type))

    @staticmethod
    def _activation_points(activation, x_points):
        if activation == "silu":
            return x_points / (1.0 + np.exp(-x_points))
        if activation == "relu":
            return np.maximum(x_points, 0.0)
        raise ValueError(f"Unknown activation: {activation}")

    def _least_square_fit(self, activation, B, samp_size, pol_degree):
        x_points = np.linspace(-B, B, samp_size)
        y_points = self._activation_points(activation, x_points)
        if pol_degree == -1:
            pol_degree = len(x_points) - 1
        return np.polyfit(x_points, y_points, pol_degree)

    def __call__(self, x):
        out, boundary_loss = self._fn(x)
        # kept lazy (device scalar): converting to float() here would force a sync
        self.current_boundary_loss = boundary_loss
        return out


class HEActivation:
    """JAX/Pallas equivalent of the PyTorch HEActivation module (forward only)."""

    def __init__(self, activation="relu", activation_params=None):
        self.activation_type = activation
        self.activation_params = activation_params or {}
        if activation == "poly":
            p = self.activation_params
            self.activation = PolyFitPallas(
                activation=p["ori_activation"], B=p["B"],
                samp_size=p["samp_size"], pol_degree=p["pol_degree"],
                learnable_coeff=p["learnable_coeffs"],
                initialization=p["initialization"],
                boundary_loss_params=p["boundary_loss_params"])
        elif activation == "relu":
            self.activation = jax.jit(functools.partial(
                _elementwise_forward,
                make_kernel=lambda dt: _relu_kernel,
                flops_per_elem=1, transc_per_elem=0))
        elif activation == "silu":
            self.activation = jax.jit(functools.partial(
                _elementwise_forward,
                make_kernel=lambda dt: functools.partial(
                    _silu_kernel, math_dtype=_math_dtype(dt)),
                flops_per_elem=4, transc_per_elem=1))
        else:
            raise ValueError(f"Unsupported activation: {activation}")

    def __call__(self, x):
        return self.activation(x)


# ---------------------------------- main ------------------------------------

if __name__ == "__main__":
    key = jax.random.PRNGKey(0)
    k1, k2, k3, k4 = jax.random.split(key, 4)

    # NCHW, as PyTorch conv activations would be.
    x = jax.random.normal(k1, (2, 4, 16, 16), dtype=jnp.float32) * 2.0
    # larger input: exercises multi-block grid + ragged last block path
    x_big = jax.random.normal(k2, (2, 32, 72, 72), dtype=jnp.float32) * 2.0
    # element count not a multiple of 128: exercises lane-padding path
    x_odd = jax.random.normal(k3, (3, 5, 7, 11), dtype=jnp.float32) * 2.0
    # bf16 input: exercises bf16 slab / bf16 math path
    x_bf = (jax.random.normal(k4, (2, 8, 32, 32), dtype=jnp.float32) * 2.0
            ).astype(jnp.bfloat16)

    relu_mod = HEActivation("relu")      # default HEActivation() -> ReLU
    silu_mod = HEActivation("silu")
    poly_params = {
        "ori_activation": "relu",
        "B": 5.0,
        "samp_size": 100,
        "pol_degree": 4,
        "learnable_coeffs": False,
        "initialization": "least_square",
        "boundary_loss_params": {"type": "l2", "penalty_B": 5.0},
    }
    poly_l2 = HEActivation("poly", poly_params)
    poly_exp = HEActivation("poly", {**poly_params,
        "boundary_loss_params": {"type": "exp", "penalty_B": 5.0}})
    poly_max = HEActivation("poly", {**poly_params,
        "boundary_loss_params": {"type": "maxnorm"}})

    y_relu = relu_mod(x)
    y_silu = silu_mod(x)
    y_poly = poly_l2(x)
    bl_l2_small = poly_l2.activation.current_boundary_loss
    y_relu_big = relu_mod(x_big)
    y_poly_big = poly_l2(x_big)
    bl_l2_big = poly_l2.activation.current_boundary_loss
    _ = poly_exp(x)
    bl_exp = poly_exp.activation.current_boundary_loss
    _ = poly_max(x_big)
    bl_max = poly_max.activation.current_boundary_loss
    y_relu_odd = relu_mod(x_odd)
    y_relu_bf = relu_mod(x_bf)
    y_silu_bf = silu_mod(x_bf)

    jax.block_until_ready((y_relu, y_silu, y_poly, y_relu_big, y_poly_big,
                           y_relu_odd, y_relu_bf, y_silu_bf,
                           bl_l2_small, bl_l2_big, bl_exp, bl_max))

    # ----------------------- numpy reference checks ------------------------
    xs = np.asarray(x, dtype=np.float64)
    xb = np.asarray(x_big, dtype=np.float64)
    xo = np.asarray(x_odd, dtype=np.float64)
    xbf = np.asarray(x_bf.astype(jnp.float32), dtype=np.float64)

    np.testing.assert_allclose(np.asarray(y_relu), np.maximum(xs, 0.0),
                               rtol=1e-6, atol=1e-6)
    np.testing.assert_allclose(np.asarray(y_relu_big), np.maximum(xb, 0.0),
                               rtol=1e-6, atol=1e-6)
    np.testing.assert_allclose(np.asarray(y_relu_odd), np.maximum(xo, 0.0),
                               rtol=1e-6, atol=1e-6)
    np.testing.assert_allclose(np.asarray(y_silu), xs / (1.0 + np.exp(-xs)),
                               rtol=1e-5, atol=1e-5)
    np.testing.assert_allclose(np.asarray(y_relu_bf.astype(jnp.float32)),
                               np.maximum(xbf, 0.0), rtol=1e-6, atol=1e-6)
    np.testing.assert_allclose(np.asarray(y_silu_bf.astype(jnp.float32)),
                               xbf / (1.0 + np.exp(-xbf)), rtol=5e-2, atol=1e-1)

    coefs64 = poly_l2.activation.coefficients.astype(np.float64)
    np.testing.assert_allclose(np.asarray(y_poly), np.polyval(coefs64, xs),
                               rtol=1e-3, atol=1e-3)
    np.testing.assert_allclose(np.asarray(y_poly_big), np.polyval(coefs64, xb),
                               rtol=1e-3, atol=1e-3)

    def np_l2(v):
        e = np.maximum(np.abs(v) - 5.0, 0.0)
        return float(np.mean(e ** 2))

    def np_exp(v):
        e = np.maximum(np.abs(v) - 5.0, 0.0)
        return float(np.mean(np.exp(e) - 1.0))

    np.testing.assert_allclose(float(bl_l2_small), np_l2(xs), rtol=1e-4, atol=1e-6)
    np.testing.assert_allclose(float(bl_l2_big), np_l2(xb), rtol=1e-3, atol=1e-6)
    np.testing.assert_allclose(float(bl_exp), np_exp(xs), rtol=1e-4, atol=1e-6)
    np.testing.assert_allclose(float(bl_max), float(np.max(np.abs(xb))),
                               rtol=1e-5, atol=1e-6)

    print("KERNEL_OK")
</pallas_src>

<mosaic_0001>
module attributes {stable_mosaic.version = 11 : i64} {
  func.func @_relu_kernel(%arg0: i32, %arg1: memref<8x128xf32, #tpu.memory_space<vmem>>, %arg2: memref<8x128xf32, #tpu.memory_space<vmem>>) attributes {dimension_semantics = [#tpu.dimension_semantics<parallel>], iteration_bounds = array<i64: 2>, scalar_prefetch = 0 : i64, scratch_operands = 0 : i64, tpu.core_type = #tpu.core_type<tc>, window_params = [{transform_indices = @transform_0, window_bounds = array<i64: 8, 128>}, {transform_indices = @transform_1, window_bounds = array<i64: 8, 128>}]} {
    %c0 = arith.constant 0 : index
    %c0_0 = arith.constant 0 : index
    %0 = vector.load %arg1[%c0, %c0_0] : memref<8x128xf32, #tpu.memory_space<vmem>>, vector<8x128xf32>
    %cst = arith.constant 0.000000e+00 : f32
    %1 = vector.broadcast %cst : f32 to vector<8x128xf32>
    %2 = arith.maximumf %0, %1 : vector<8x128xf32>
    %c0_1 = arith.constant 0 : index
    %c0_2 = arith.constant 0 : index
    %3 = vector.load %arg2[%c0_1, %c0_2] : memref<8x128xf32, #tpu.memory_space<vmem>>, vector<8x128xf32>
    tpu.vector_store %arg2[%c0_1, %c0_2], %2 {strides = array<i32>} : memref<8x128xf32, #tpu.memory_space<vmem>>, vector<8x128xf32>,
    return
  }
  func.func @transform_0(%arg0: i32) -> (i32, i32) {
    %c0_i32 = arith.constant 0 : i32
    %c0_i32_0 = arith.constant 0 : i32
    return %arg0, %c0_i32 : i32, i32
  }
  func.func @transform_1(%arg0: i32) -> (i32, i32) {
    %c0_i32 = arith.constant 0 : i32
    %c0_i32_0 = arith.constant 0 : i32
    return %arg0, %c0_i32 : i32, i32
  }
}

</mosaic_0001>

<bundles_post_ra>
// kernel: _elementwise_forward.1
= control target key start
LH: loop header
LB: loop body
LE: loop exit
PB: predicated region body
PF: predicated region fallthrough
CT: control target
= control target key end

     0   :  { %s189_s6 = smov 0   ;;  %s209_s0 = inlined_call_operand.vmem [shape: f32[16,128], index: 0, kind: input, shape index: {}]   ;;  %s210_s1 = inlined_call_operand.vmem [shape: f32[16,128], index: 1, kind: output, shape index: {}]  }
   0x1 LB: > { %s168_s7 = sadd.s32 4294967295, %s191_s6   ;;  %p172_p0 = scmp.ge.s32.totalorder %s191_s6, 1  ;;  %s191_s6 = sphi %s189_s6, %s11_s6  }
   0x2   : > { %p86_p1 = scmp.lt.s32.totalorder %s191_s6, 3 }
   0x4   : > { %p87_p2 = pnand %p172_p0, %p86_p1 }
   0x5   : > { %p104_p3 = scmp.lt.s32.totalorder (!%p87_p2), %s168_s7, 1 }
   0x6   : > { %90 = sbr.rel (%p87_p2) target bundleno = 20 (0x14), region = 24 }
   0xd   : > { %s212_s7 = smov (!%p104_p3, %s168_s7), 1 }
   0xe   : > { %s173_s8 = sshll.u32 %s212_s7, 3 }
   0xf   : > { %s107_s11 = scalar_lea.vmem %s209_s0, %s173_s8  ;;  %s111_s14 = scalar_lea.vmem %s210_s1, %s173_s8 }
  0x10   : > { %v112_v0 = vld [vmem:[%s107_s11] sm:$0xff] }
  0x11   : > { %v113_v1 = vmax.f32 %v112_v0, 0.0 }
  0x13   : > { %114 = vst [vmem:[%s111_s14] sm:$0xff] %v113_v1 }
  0x14 PF: > { %s11_s6 = sadd.s32 1, %s191_s6  }
  0x15   : > { %p8_p4 = scmp.ge.s32.totalorder %s11_s6, 4  }
  0x17   :  { %10 = sbr.rel (!%p8_p4) target bundleno = 1 (0x1), region = 54 }

</bundles_post_ra>
